<compile_context>
chip_gen: v7x
topology: tpu7x:2x2x1
jax: 0.10.0
libtpu: 0.0.40
codegen_flags: <defaults>
</compile_context>

<pallas_src>
import jax
import jax.numpy as jnp
from jax.experimental import pallas as pl
from jax.experimental.pallas import tpu as pltpu


_LANE = 128
# Below this size the Pallas invocation + DMA setup dominates; XLA's native
# transpose (usually fused into the consumer) is strictly faster.
_MIN_PALLAS_BYTES = 256 * 1024
# Budget for 2x double-buffered (input tile + output tile) = 4 * TC * TL * itemsize.
_TILE_BUDGET_BYTES = 8 * 1024 * 1024


def _transpose_kernel(x_ref, o_ref):
    # x_ref: (1, TC, TL) tile in VMEM; o_ref: (1, TL, TC) tile in VMEM.
    # The axis swap lowers to an on-chip XLU transpose; kernel is mem-bound.
    o_ref[...] = jnp.swapaxes(x_ref[...], 1, 2)


def _round_down_multiple(x, m):
    return max((x // m) * m, m)


def _choose_tiles(C, L, itemsize, tile_c=None, tile_l=None):
    """Pick (TC, TL) with 4 * TC * TL * itemsize <= _TILE_BUDGET_BYTES.

    Alignment rules (the transpose swaps which dim is lane vs sublane, so a
    tiled dim must be a multiple of 128 to be safe on both sides; a full dim
    is always legal):
      TC == C  or  TC % 128 == 0
      TL == L  or  TL % 128 == 0
    """
    budget_elems = max(_TILE_BUDGET_BYTES // (4 * itemsize), _LANE * _LANE)

    if tile_c is None:
        # Prefer full C: keeps the output last dim as lane-dense as possible.
        if C * _LANE <= budget_elems:
            tile_c = C
        else:
            tile_c = _round_down_multiple(budget_elems // _LANE, _LANE)
    if tile_l is None:
        tile_l = budget_elems // max(tile_c, 1)

    tile_c = min(tile_c, C)
    tile_l = min(tile_l, L)
    if tile_c != C:
        tile_c = _round_down_multiple(tile_c, _LANE)
    if tile_l != L:
        tile_l = _round_down_multiple(tile_l, _LANE)
    return tile_c, tile_l


def pallas_transpose(x, dim0: int, dim1: int, *, force_pallas: bool = False,
                     tile_c=None, tile_l=None):
    """Equivalent of torch.transpose(x, dim0, dim1).

    The rank-3 (B, C, L) <-> (B, L, C) case used by Feature_Extraction_Layer
    is implemented as a tiled Pallas kernel; other configurations fall back to
    plain JAX (same semantics, just not a custom kernel).
    """
    ndim = x.ndim
    d0 = dim0 % ndim
    d1 = dim1 % ndim
    if d0 == d1:
        return x
    if ndim != 3 or {d0, d1} != {1, 2}:
        # TODO(synk): general-rank / arbitrary-axis transpose is left to XLA;
        # only the (B, C, L) <-> (B, L, C) case used by the module gets a kernel.
        return jnp.swapaxes(x, d0, d1)

    itemsize = jnp.dtype(x.dtype).itemsize
    total_bytes = x.size * itemsize
    if total_bytes < _MIN_PALLAS_BYTES and not force_pallas:
        # Tiny input: per-call / per-grid-step overhead dominates the copy.
        return jnp.swapaxes(x, 1, 2)

    B, C, L = x.shape
    TC, TL = _choose_tiles(C, L, itemsize, tile_c=tile_c, tile_l=tile_l)

    # Double-buffered input + output tiles, plus a little headroom.
    needed_bytes = 4 * TC * TL * itemsize
    vmem_limit = min(max(2 * needed_bytes, 16 * 1024 * 1024), 48 * 1024 * 1024)

    grid = (B, pl.cdiv(C, TC), pl.cdiv(L, TL))

    return pl.pallas_call(
        _transpose_kernel,
        out_shape=jax.ShapeDtypeStruct((B, L, C), x.dtype),
        grid_spec=pltpu.PrefetchScalarGridSpec(
            num_scalar_prefetch=0,
            grid=grid,
            in_specs=[pl.BlockSpec((1, TC, TL), lambda b, c, l: (b, c, l))],
            out_specs=pl.BlockSpec((1, TL, TC), lambda b, c, l: (b, l, c)),
        ),
        compiler_params=pltpu.CompilerParams(
            dimension_semantics=("parallel", "parallel", "parallel"),
            vmem_limit_bytes=vmem_limit,
        ),
        cost_estimate=pl.CostEstimate(
            flops=0,
            transcendentals=0,
            bytes_accessed=2 * total_bytes,
        ),
    )(x)


if __name__ == "__main__":
    key = jax.random.PRNGKey(0)
    k1, k2, k3 = jax.random.split(key, 3)

    # 1) Main case: (B, C, L) -> (B, L, C) through the Pallas kernel.
    x1 = jax.random.normal(k1, (2, 16, 512), dtype=jnp.float32)
    y1 = jax.block_until_ready(pallas_transpose(x1, 1, 2, force_pallas=True))
    y1_ref = jnp.swapaxes(x1, 1, 2)
    assert y1.shape == y1_ref.shape, (y1.shape, y1_ref.shape)
    assert jnp.array_equal(y1, y1_ref), "Pallas transpose mismatch (aligned case)"

    # 2) Uneven L with an explicit 128-wide L tile: exercises partial edge
    #    blocks (OOB read padding transposed into discarded OOB output rows).
    x2 = jax.random.normal(k2, (2, 16, 200), dtype=jnp.float32)
    y2 = jax.block_until_ready(
        pallas_transpose(x2, 1, 2, force_pallas=True, tile_l=128))
    y2_ref = jnp.swapaxes(x2, 1, 2)
    assert jnp.array_equal(y2, y2_ref), "Pallas transpose mismatch (ragged case)"

    # 3) Tiny input: takes the non-Pallas fallback (per-call overhead dominates).
    x3 = jax.random.normal(k3, (2, 16, 32), dtype=jnp.float32)
    y3 = jax.block_until_ready(pallas_transpose(x3, 1, 2))
    assert jnp.array_equal(y3, jnp.swapaxes(x3, 1, 2)), "fallback mismatch"

    print("KERNEL_OK")
</pallas_src>

<mosaic_0001>
module attributes {stable_mosaic.version = 11 : i64} {
  func.func @_transpose_kernel(%arg0: i32, %arg1: i32, %arg2: i32, %arg3: memref<1x16x512xf32, #tpu.memory_space<vmem>>, %arg4: memref<1x512x16xf32, #tpu.memory_space<vmem>>) attributes {dimension_semantics = [#tpu.dimension_semantics<parallel>, #tpu.dimension_semantics<parallel>, #tpu.dimension_semantics<parallel>], iteration_bounds = array<i64: 2, 1, 1>, scalar_prefetch = 0 : i64, scratch_operands = 0 : i64, tpu.core_type = #tpu.core_type<tc>, window_params = [{transform_indices = @transform_0, window_bounds = array<i64: 1, 16, 512>}, {transform_indices = @transform_1, window_bounds = array<i64: 1, 512, 16>}]} {
    %c0 = arith.constant 0 : index
    %c0_0 = arith.constant 0 : index
    %c0_1 = arith.constant 0 : index
    %0 = vector.load %arg3[%c0, %c0_0, %c0_1] : memref<1x16x512xf32, #tpu.memory_space<vmem>>, vector<1x16x512xf32>
    %1 = tpu.transpose %0, [0, 2, 1] : vector<1x16x512xf32> -> vector<1x512x16xf32>
    %c0_2 = arith.constant 0 : index
    %c0_3 = arith.constant 0 : index
    %c0_4 = arith.constant 0 : index
    %2 = vector.load %arg4[%c0_2, %c0_3, %c0_4] : memref<1x512x16xf32, #tpu.memory_space<vmem>>, vector<1x512x16xf32>
    tpu.vector_store %arg4[%c0_2, %c0_3, %c0_4], %1 {strides = array<i32>} : memref<1x512x16xf32, #tpu.memory_space<vmem>>, vector<1x512x16xf32>,
    return
  }
  func.func @transform_0(%arg0: i32, %arg1: i32, %arg2: i32) -> (i32, i32, i32) {
    %c0_i32 = arith.constant 0 : i32
    return %arg0, %arg1, %arg2 : i32, i32, i32
  }
  func.func @transform_1(%arg0: i32, %arg1: i32, %arg2: i32) -> (i32, i32, i32) {
    %c0_i32 = arith.constant 0 : i32
    return %arg0, %arg2, %arg1 : i32, i32, i32
  }
}

</mosaic_0001>

<bundles_post_ra>
// kernel: tpu_custom_call.1
= control target key start
LH: loop header
LB: loop body
LE: loop exit
PB: predicated region body
PF: predicated region fallthrough
CT: control target
= control target key end

     0   :  { %6 = vsyncpa [#allocation3], 0  ;;  %s919_s0 = inlined_call_operand.hbm [shape: f32[2,16,512], index: 0, kind: input, shape index: {}]   ;;  %s920_s1 = inlined_call_operand.vmem [shape: f32[2,512,16], index: 1, kind: output, shape index: {}]  }
   0x1   :  { %8 = vsyncpa [#allocation3 + $0x1], 0  ;;  %s665_s6 = smov 0   ;;  %s667_s7 = smov 0  }
   0x2   :  { %s669_s8 = smov 0   ;;  %s671_s9 = smov 0  }
   0x3   :  { %s673_s10 = smov 0   ;;  %s675_s11 = smov 0  }
   0x4 LB: > { %s497_s12 = sadd.s32 4294967295, %s650_s11   ;;  %s33_s13 = sadd.s32 1, %s646_s10  ;;  %s650_s11 = sphi %s675_s11, %s14_s11   ;;  %s646_s10 = sphi %s673_s10, %s928_s10   ;;  %s642_s9 = sphi %s671_s9, %s927_s9   ;;  %s638_s8 = sphi %s669_s8, %s926_s8   ;;  %s634_s7 = sphi %s667_s7, %s925_s7   ;;  %s630_s6 = sphi %s665_s6, %s924_s6  }
   0x5   : > { %p35_p0 = scmp.ge.s32.totalorder %s33_s13, 2  ;;  %s44_s14 = sadd.s32 1, %s638_s8 }
   0x6   : > { %p51_p1 = scmp.ne.s32.totalorder %s638_s8, %s634_s7  ;;  %p52_p2 = scmp.eq.s32.totalorder %s650_s11, 0 }
   0x7   : > { %s930_s13 = smov (%p35_p0, %s33_s13), 0  ;;  %p57_p4 = scmp.ne.s32.totalorder %s634_s7, %s630_s6 }
   0x8   : > { %p701_p3 = por %p52_p2, %p51_p1  ;;  %s37_s16 = ssub.s32 %s646_s10, %s930_s13 }
   0x9   : > { %p58_p5 = scmp.eq.s32.totalorder %s497_s12, 0  ;;  %p42_p6 = scmp.eq.s32.totalorder %s37_s16, 0 }
   0xa   : > { %p518_p8 = scmp.lt.s32.totalorder %s650_s11, 2  ;;  %s111_s19 = sand.u32 1, %s638_s8  }
   0xb   : > { %p708_p7 = por %p58_p5, %p57_p4  ;;  %s510_s20 = sshll.u32 %s646_s10, 10 }
   0xc   : > { %s714_s18 = scalar_select %p42_p6, %s638_s8, %s44_s14  }
   0xd   : > { %s501_s21 = sshll.u32 %s111_s19, 6  ;;  %s721_s24 = scalar_lea.hbm %s919_s0, %s510_s20 }
   0xe   : > { %s115_s25 = scalar_lea.vmem [#allocation2], %s501_s21  ;;  %p725_p9 = pnand %p518_p8, %p701_p3 }
   0xf   : > { %s127_s26 = sshll.u32 %s115_s25, 4  ;;  %s731_s28 = scalar_lea.sflag [#allocation3], %s111_s19  ;;  %s729_s26 = int_to_ptr.vmem [resolvable:$true] %s127_s26 }
  0x10   : > { %s570_s29 = scalar_lea.hbm %s721_s24, 1024  ;;  %p572_p11 = pneg %p725_p9 }
  0x11   : > { %p571_p10 = scmp.ne.s32.totalorder %s721_s24, %s570_s29  ;;  %s575_s3 = scalar_lea.hbm %s919_s0, 2048 }
  0x12   : > { %p576_p0 = scmp.lt.u32.totalorder %s721_s24, %s919_s0  ;;  %p577_p1 = scmp.lt.u32.totalorder %s575_s3, %s570_s29 }
  0x13   : > { %p573_p12 = pnand %p572_p11, %p571_p10  ;;  %p579_p3 = scmp.lt.u32.totalorder %s570_s29, %s721_s24 }
  0x14   : > { %p578_p2 = por %p577_p1, %p576_p0 }
  0x15   : > { %p574_p13 = pneg %p573_p12 }
  0x16   : > { %p580_p4 = por %p579_p3, %p578_p2 }
  0x18   : > { %p581_p5 = pnand %p580_p4, %p574_p13 }
  0x1a   : > { %584 = shalt.err (!%p581_p5)
}
  0x1b   : > { %s585_s6 = scalar_lea.vmem %s729_s26, 1024  ;;  %s652_s12 = smov [#allocation2]  }
  0x1c   : > { %p586_p6 = scmp.ne.s32.totalorder %s729_s26, %s585_s6  ;;  %s590_s14 = sshll.u32 %s652_s12, 4  ;;  %s591_s14 = int_to_ptr.vmem [resolvable:$false] %s590_s14 }
  0x1d   : > { %s592_s15 = scalar_lea.vmem %s591_s14, 2048  ;;  %p593_p12 = scmp.lt.s32.totalorder %s729_s26, %s591_s14 }
  0x1e   : > { %p588_p8 = pnand %p586_p6, %p572_p11  ;;  %p594_p0 = scmp.lt.s32.totalorder %s592_s15, %s585_s6 }
  0x20   : > { %p589_p10 = pneg %p588_p8  ;;  %p595_p1 = por %p594_p0, %p593_p12 }
  0x22   : > { %p596_p2 = pnand %p595_p1, %p589_p10 }
  0x24   : > { %599 = shalt.err (!%p596_p2)
}
  0x25   : > { %s653_s16 = smov 512   ;;  %s654_s19 = smov 32  }
  0x26   : > { %517 = dma.hbm_to_vmem [thread:$0]  (!%p725_p9), %s721_s24, 1024, %s729_s26, %s731_s28, %s653_s16, %s653_s16, %s654_s19  }
  0x27   : > { %p504_p11 = scmp.ge.s32.totalorder %s650_s11, 1  ;;  %p135_p13 = scmp.lt.s32.totalorder %s650_s11, 3 }
  0x29   : > { %p136_p3 = pnand %p504_p11, %p135_p13 }
  0x2a   : > { %s141_s20 = sand.u32 (!%p136_p3), 1, %s634_s7  }
  0x2b   : > { %139 = sbr.rel (%p136_p3) target bundleno = 306 (0x132), region = 24  ;;  %s505_s21 = sshll.u32 (!%p136_p3), %s141_s20, 6 }
  0x2c   : > { %s142_s22 = scalar_lea.sflag (!%p136_p3), [#allocation3], %s141_s20  ;;  %s145_s23 = scalar_lea.vmem (!%p136_p3), [#allocation2], %s505_s21 }
  0x32   : > { %625 = dma.done.wait (%p708_p7), %s142_s22, 1024  }
  0x33   : > { %627 = vsyncadd (%p708_p7), %s142_s22, 4294966272  ;;  %v187_v0 = vld [vmem:[%s145_s23 + $0x8] sm:$0xff]  ;;  %v186_v1 = vld [vmem:[%s145_s23] sm:$0xff]  ;;  %p174_p9 = scmp.lt.s32.totalorder %s642_s9, 1  ;;  %vm322_vm0 = vcmask 130048  }
  0x34   : > { %226 = vxpose.xlu1.b32.start [1/2] (short) %v187_v0, 128  ;;  %194 = vxpose.xlu0.b32.start [1/2] (short) %v186_v1, 128  ;;  %v191_v2 = vld [vmem:[%s145_s23 + $0x28] sm:$0xff]  ;;  %v190_v3 = vld [vmem:[%s145_s23 + $0x20] sm:$0xff]  ;;  %v189_v4 = vld [vmem:[%s145_s23 + $0x18] sm:$0xff] }
  0x35   : > { %v188_v5 = vld [vmem:[%s145_s23 + $0x10] sm:$0xff]  ;;  %v193_v6 = vld [vmem:[%s145_s23 + $0x38] sm:$0xff]  ;;  %s932_s9 = smov (!%p174_p9, %s642_s9), 1 }
  0x36   : > { %v192_v7 = vld [vmem:[%s145_s23 + $0x30] sm:$0xff]  ;;  %s511_s17 = sshll.u32 %s932_s9, 9 }
  0x37   : > { %s771_s26 = scalar_lea.vmem %s920_s1, %s511_s17 }
  0x38   : > { %227 = vxpose.xlu1.b32.end [2/2] (short) %v191_v2, 128  ;;  %195 = vxpose.xlu0.b32.end [2/2] (short) %v190_v3, 128 }
  0x71   : > { %290 = vxpose.xlu1.b32.start [1/2] (short) %v189_v4, 128  ;;  %258 = vxpose.xlu0.b32.start [1/2] (short) %v188_v5, 128 }
  0x75   : > { %291 = vxpose.xlu1.b32.end [2/2] (short) %v193_v6, 128  ;;  %259 = vxpose.xlu0.b32.end [2/2] (short) %v192_v7, 128 }
  0xb4   : > { %v242_v8 = vpop.trf.xlu1  ;;  %v210_v9 = vpop.trf.xlu0 }
  0xb5   : > { %339 = vst.msk [vmem:[%s771_s26 + $0x80] sm:$0xff] %vm322_vm0, %v242_v8  ;;  %323 = vst.msk [vmem:[%s771_s26] sm:$0xff] %vm322_vm0, %v210_v9 }
  0xb8   : > { %v243_v10 = vpop.trf.xlu1  ;;  %v211_v11 = vpop.trf.xlu0 }
  0xb9   : > { %340 = vst.msk [vmem:[%s771_s26 + $0x88] sm:$0xff] %vm322_vm0, %v243_v10  ;;  %324 = vst.msk [vmem:[%s771_s26 + $0x8] sm:$0xff] %vm322_vm0, %v211_v11 }
  0xbc   : > { %v244_v12 = vpop.trf.xlu1  ;;  %v212_v13 = vpop.trf.xlu0 }
  0xbd   : > { %341 = vst.msk [vmem:[%s771_s26 + $0x90] sm:$0xff] %vm322_vm0, %v244_v12  ;;  %325 = vst.msk [vmem:[%s771_s26 + $0x10] sm:$0xff] %vm322_vm0, %v212_v13 }
  0xc0   : > { %v245_v14 = vpop.trf.xlu1  ;;  %v213_v15 = vpop.trf.xlu0 }
  0xc1   : > { %342 = vst.msk [vmem:[%s771_s26 + $0x98] sm:$0xff] %vm322_vm0, %v245_v14  ;;  %326 = vst.msk [vmem:[%s771_s26 + $0x18] sm:$0xff] %vm322_vm0, %v213_v15 }
  0xc4   : > { %v246_v16 = vpop.trf.xlu1  ;;  %v214_v17 = vpop.trf.xlu0 }
  0xc5   : > { %343 = vst.msk [vmem:[%s771_s26 + $0xa0] sm:$0xff] %vm322_vm0, %v246_v16  ;;  %327 = vst.msk [vmem:[%s771_s26 + $0x20] sm:$0xff] %vm322_vm0, %v214_v17 }
  0xc8   : > { %v247_v18 = vpop.trf.xlu1  ;;  %v215_v19 = vpop.trf.xlu0 }
  0xc9   : > { %344 = vst.msk [vmem:[%s771_s26 + $0xa8] sm:$0xff] %vm322_vm0, %v247_v18  ;;  %328 = vst.msk [vmem:[%s771_s26 + $0x28] sm:$0xff] %vm322_vm0, %v215_v19 }
  0xcc   : > { %v248_v20 = vpop.trf.xlu1  ;;  %v216_v21 = vpop.trf.xlu0 }
  0xcd   : > { %345 = vst.msk [vmem:[%s771_s26 + $0xb0] sm:$0xff] %vm322_vm0, %v248_v20  ;;  %329 = vst.msk [vmem:[%s771_s26 + $0x30] sm:$0xff] %vm322_vm0, %v216_v21 }
  0xd0   : > { %v249_v22 = vpop.trf.xlu1  ;;  %v217_v23 = vpop.trf.xlu0 }
  0xd1   : > { %346 = vst.msk [vmem:[%s771_s26 + $0xb8] sm:$0xff] %vm322_vm0, %v249_v22  ;;  %330 = vst.msk [vmem:[%s771_s26 + $0x38] sm:$0xff] %vm322_vm0, %v217_v23 }
  0xd4   : > { %v250_v24 = vpop.trf.xlu1  ;;  %v218_v25 = vpop.trf.xlu0 }
  0xd5   : > { %347 = vst.msk [vmem:[%s771_s26 + $0xc0] sm:$0xff] %vm322_vm0, %v250_v24  ;;  %331 = vst.msk [vmem:[%s771_s26 + $0x40] sm:$0xff] %vm322_vm0, %v218_v25 }
  0xd8   : > { %v251_v26 = vpop.trf.xlu1  ;;  %v219_v27 = vpop.trf.xlu0 }
  0xd9   : > { %348 = vst.msk [vmem:[%s771_s26 + $0xc8] sm:$0xff] %vm322_vm0, %v251_v26  ;;  %332 = vst.msk [vmem:[%s771_s26 + $0x48] sm:$0xff] %vm322_vm0, %v219_v27 }
  0xdc   : > { %v252_v28 = vpop.trf.xlu1  ;;  %v220_v29 = vpop.trf.xlu0 }
  0xdd   : > { %349 = vst.msk [vmem:[%s771_s26 + $0xd0] sm:$0xff] %vm322_vm0, %v252_v28  ;;  %333 = vst.msk [vmem:[%s771_s26 + $0x50] sm:$0xff] %vm322_vm0, %v220_v29 }
  0xe0   : > { %v253_v30 = vpop.trf.xlu1  ;;  %v221_v31 = vpop.trf.xlu0 }
  0xe1   : > { %350 = vst.msk [vmem:[%s771_s26 + $0xd8] sm:$0xff] %vm322_vm0, %v253_v30  ;;  %334 = vst.msk [vmem:[%s771_s26 + $0x58] sm:$0xff] %vm322_vm0, %v221_v31 }
  0xe4   : > { %v254_v32 = vpop.trf.xlu1  ;;  %v222_v33 = vpop.trf.xlu0 }
  0xe5   : > { %351 = vst.msk [vmem:[%s771_s26 + $0xe0] sm:$0xff] %vm322_vm0, %v254_v32  ;;  %335 = vst.msk [vmem:[%s771_s26 + $0x60] sm:$0xff] %vm322_vm0, %v222_v33 }
  0xe8   : > { %v255_v34 = vpop.trf.xlu1  ;;  %v223_v35 = vpop.trf.xlu0 }
  0xe9   : > { %352 = vst.msk [vmem:[%s771_s26 + $0xe8] sm:$0xff] %vm322_vm0, %v255_v34  ;;  %336 = vst.msk [vmem:[%s771_s26 + $0x68] sm:$0xff] %vm322_vm0, %v223_v35 }
  0xec   : > { %v256_v36 = vpop.trf.xlu1  ;;  %v224_v37 = vpop.trf.xlu0 }
  0xed   : > { %353 = vst.msk [vmem:[%s771_s26 + $0xf0] sm:$0xff] %vm322_vm0, %v256_v36  ;;  %337 = vst.msk [vmem:[%s771_s26 + $0x70] sm:$0xff] %vm322_vm0, %v224_v37 }
  0xf0   : > { %v257_v38 = vpop.trf.xlu1  ;;  %v225_v39 = vpop.trf.xlu0 }
  0xf1   : > { %354 = vst.msk [vmem:[%s771_s26 + $0xf8] sm:$0xff] %vm322_vm0, %v257_v38  ;;  %338 = vst.msk [vmem:[%s771_s26 + $0x78] sm:$0xff] %vm322_vm0, %v225_v39 }
  0xf4   : > { %v306_v40 = vpop.trf.xlu1  ;;  %v274_v41 = vpop.trf.xlu0 }
  0xf5   : > { %371 = vst.msk [vmem:[%s771_s26 + $0x180] sm:$0xff] %vm322_vm0, %v306_v40  ;;  %355 = vst.msk [vmem:[%s771_s26 + $0x100] sm:$0xff] %vm322_vm0, %v274_v41 }
  0xf8   : > { %v307_v42 = vpop.trf.xlu1  ;;  %v275_v43 = vpop.trf.xlu0 }
  0xf9   : > { %372 = vst.msk [vmem:[%s771_s26 + $0x188] sm:$0xff] %vm322_vm0, %v307_v42  ;;  %356 = vst.msk [vmem:[%s771_s26 + $0x108] sm:$0xff] %vm322_vm0, %v275_v43 }
  0xfc   : > { %v308_v44 = vpop.trf.xlu1  ;;  %v276_v45 = vpop.trf.xlu0 }
  0xfd   : > { %373 = vst.msk [vmem:[%s771_s26 + $0x190] sm:$0xff] %vm322_vm0, %v308_v44  ;;  %357 = vst.msk [vmem:[%s771_s26 + $0x110] sm:$0xff] %vm322_vm0, %v276_v45 }
 0x100   : > { %v309_v46 = vpop.trf.xlu1  ;;  %v277_v47 = vpop.trf.xlu0 }
 0x101   : > { %374 = vst.msk [vmem:[%s771_s26 + $0x198] sm:$0xff] %vm322_vm0, %v309_v46  ;;  %358 = vst.msk [vmem:[%s771_s26 + $0x118] sm:$0xff] %vm322_vm0, %v277_v47 }
 0x104   : > { %v310_v48 = vpop.trf.xlu1  ;;  %v278_v49 = vpop.trf.xlu0 }
 0x105   : > { %375 = vst.msk [vmem:[%s771_s26 + $0x1a0] sm:$0xff] %vm322_vm0, %v310_v48  ;;  %359 = vst.msk [vmem:[%s771_s26 + $0x120] sm:$0xff] %vm322_vm0, %v278_v49 }
 0x108   : > { %v311_v50 = vpop.trf.xlu1  ;;  %v279_v51 = vpop.trf.xlu0 }
 0x109   : > { %376 = vst.msk [vmem:[%s771_s26 + $0x1a8] sm:$0xff] %vm322_vm0, %v311_v50  ;;  %360 = vst.msk [vmem:[%s771_s26 + $0x128] sm:$0xff] %vm322_vm0, %v279_v51 }
 0x10c   : > { %v312_v52 = vpop.trf.xlu1  ;;  %v280_v53 = vpop.trf.xlu0 }
 0x10d   : > { %377 = vst.msk [vmem:[%s771_s26 + $0x1b0] sm:$0xff] %vm322_vm0, %v312_v52  ;;  %361 = vst.msk [vmem:[%s771_s26 + $0x130] sm:$0xff] %vm322_vm0, %v280_v53 }
 0x110   : > { %v313_v54 = vpop.trf.xlu1  ;;  %v281_v55 = vpop.trf.xlu0 }
 0x111   : > { %378 = vst.msk [vmem:[%s771_s26 + $0x1b8] sm:$0xff] %vm322_vm0, %v313_v54  ;;  %362 = vst.msk [vmem:[%s771_s26 + $0x138] sm:$0xff] %vm322_vm0, %v281_v55 }
 0x114   : > { %v314_v56 = vpop.trf.xlu1  ;;  %v282_v57 = vpop.trf.xlu0 }
 0x115   : > { %379 = vst.msk [vmem:[%s771_s26 + $0x1c0] sm:$0xff] %vm322_vm0, %v314_v56  ;;  %363 = vst.msk [vmem:[%s771_s26 + $0x140] sm:$0xff] %vm322_vm0, %v282_v57 }
 0x118   : > { %v315_v58 = vpop.trf.xlu1  ;;  %v283_v59 = vpop.trf.xlu0 }
 0x119   : > { %380 = vst.msk [vmem:[%s771_s26 + $0x1c8] sm:$0xff] %vm322_vm0, %v315_v58  ;;  %364 = vst.msk [vmem:[%s771_s26 + $0x148] sm:$0xff] %vm322_vm0, %v283_v59 }
 0x11c   : > { %v316_v60 = vpop.trf.xlu1  ;;  %v284_v61 = vpop.trf.xlu0 }
 0x11d   : > { %381 = vst.msk [vmem:[%s771_s26 + $0x1d0] sm:$0xff] %vm322_vm0, %v316_v60  ;;  %365 = vst.msk [vmem:[%s771_s26 + $0x150] sm:$0xff] %vm322_vm0, %v284_v61 }
 0x120   : > { %v317_v62 = vpop.trf.xlu1  ;;  %v285_v63 = vpop.trf.xlu0 }
 0x121   : > { %382 = vst.msk [vmem:[%s771_s26 + $0x1d8] sm:$0xff] %vm322_vm0, %v317_v62  ;;  %366 = vst.msk [vmem:[%s771_s26 + $0x158] sm:$0xff] %vm322_vm0, %v285_v63 }
 0x124   : > { %v318_v0 = vpop.trf.xlu1  ;;  %v286_v1 = vpop.trf.xlu0 }
 0x125   : > { %383 = vst.msk [vmem:[%s771_s26 + $0x1e0] sm:$0xff] %vm322_vm0, %v318_v0  ;;  %367 = vst.msk [vmem:[%s771_s26 + $0x160] sm:$0xff] %vm322_vm0, %v286_v1 }
 0x128   : > { %v319_v2 = vpop.trf.xlu1  ;;  %v287_v3 = vpop.trf.xlu0 }
 0x129   : > { %384 = vst.msk [vmem:[%s771_s26 + $0x1e8] sm:$0xff] %vm322_vm0, %v319_v2  ;;  %368 = vst.msk [vmem:[%s771_s26 + $0x168] sm:$0xff] %vm322_vm0, %v287_v3 }
 0x12c   : > { %v320_v4 = vpop.trf.xlu1  ;;  %v288_v5 = vpop.trf.xlu0 }
 0x12d   : > { %385 = vst.msk [vmem:[%s771_s26 + $0x1f0] sm:$0xff] %vm322_vm0, %v320_v4  ;;  %369 = vst.msk [vmem:[%s771_s26 + $0x170] sm:$0xff] %vm322_vm0, %v288_v5 }
 0x130   : > { %v321_v6 = vpop.trf.xlu1  ;;  %v289_v7 = vpop.trf.xlu0 }
 0x131   : > { %386 = vst.msk [vmem:[%s771_s26 + $0x1f8] sm:$0xff] %vm322_vm0, %v321_v6  ;;  %370 = vst.msk [vmem:[%s771_s26 + $0x178] sm:$0xff] %vm322_vm0, %v289_v7 }
 0x132 PF: > { %s14_s11 = sadd.s32 1, %s650_s11   ;;  %s924_s6 = smov %s634_s7 }
 0x133   : > { %p11_p7 = scmp.ge.s32.totalorder %s14_s11, 4   ;;  %s925_s7 = smov %s638_s8 }
 0x134   : > { %s926_s8 = smov %s714_s18  ;;  %s927_s9 = smov %s646_s10 }
 0x135   : > { %s928_s10 = smov %s930_s13  ;;  %13 = sbr.rel (!%p11_p7) target bundleno = 4 (0x4), region = 64 }
 0x13c   :  { %423 = vsyncpa [#allocation3], 1 }
 0x13d   :  { %425 = vsyncpa [#allocation3 + $0x1], 1 }

</bundles_post_ra>
